<compile_context>
chip_gen: v7x
topology: tpu7x:2x2x1
jax: 0.10.0
libtpu: 0.0.40
codegen_flags: <defaults>
</compile_context>

<pallas_src>
from functools import partial

import jax
import jax.numpy as jnp
from jax.experimental import pallas as pl
from jax.experimental.pallas import tpu as pltpu

NEG_SLOPE = 0.01  # torch.nn.functional.leaky_relu default negative_slope


def _round_up(v, m):
    return ((v + m - 1) // m) * m


def _fused_eager_net_kernel(n_hidden, d_act, compute_dtype,
                            x_ref, wcat_ref, bcat_ref, wend_ref, bend_ref,
                            h_out_ref, out_ref):
    """Whole-network forward for one batch tile.

    x_ref     : (TB, D_act)            f32, zero-padded input activations
    wcat_ref  : (L, D_act, D_act+D_out) compute_dtype (pre-cast), hidden block in
                lanes [0, D_act), output block in lanes [D_act, D_act+D_out)
    bcat_ref  : (L, 1, D_act+D_out)    f32 combined bias
    wend_ref  : (D_act, D_out)         compute_dtype, end-layer weight
    bend_ref  : (1, D_out)             f32 end-layer bias
    h_out_ref : (L, TB, D_act)         f32 leaky_relu hidden activations -> all_xs[1:]
    out_ref   : (L+1, TB, D_out)       f32 per-layer outputs            -> all_outputs
    """
    x = x_ref[...]                        # f32 activations stay live on-chip
    for l in range(n_hidden):             # statically unrolled (n_layers is small)
        # ONE combined MXU matmul per layer; f32 accumulate + f32 bias add.
        acc = jnp.dot(x.astype(compute_dtype), wcat_ref[l],
                      preferred_element_type=jnp.float32) + bcat_ref[l]
        # Static, 128-aligned lane splits -> lane-dense unmasked stores.
        out_ref[l] = acc[:, d_act:]                       # output branch
        y_h = acc[:, :d_act]                              # hidden branch
        h = jnp.where(y_h >= 0, y_h, NEG_SLOPE * y_h)     # f32 leaky_relu epilogue
        h_out_ref[l] = h
        x = h
    # End layer (output only, narrow D_out-wide matmul).
    out_ref[n_hidden] = (jnp.dot(x.astype(compute_dtype), wend_ref[...],
                                 preferred_element_type=jnp.float32)
                         + bend_ref[...])


def eager_net_forward(params, x, n_output, layer_size,
                      compute_dtype=jnp.bfloat16):
    """Pallas implementation of EagerNet.forward -> (all_outputs, all_xs).

    compute_dtype: MXU operand dtype (bf16 recommended on v5e/v6e/v7x;
    accumulation, bias add and leaky_relu are always f32).
    """
    B, n_input = x.shape
    n_layers = len(params["middle"])
    L = n_layers + 1                                   # layers producing a hidden h

    # Separate padded widths (review item): activations/hidden vs outputs.
    D_act = _round_up(max(n_input, layer_size), 128)
    D_out = _round_up(n_output, 128)
    D_cat = D_act + D_out

    # Batch tiling: TB <= ~128, B_pad close to B, and >= 2 grid steps when the
    # batch is large enough so the "parallel" axis can use both TCs on v7x.
    B8 = _round_up(max(B, 8), 8)
    if B8 >= 16:
        num_tiles = max(2, pl.cdiv(B8, 128))
        TB = _round_up(pl.cdiv(B8, num_tiles), 8)
    else:
        num_tiles = 1
        TB = B8
    B_pad = num_tiles * TB

    def pad2(a, rows, cols):
        return jnp.pad(a, ((0, rows - a.shape[0]), (0, cols - a.shape[1])))

    # Build combined (hidden | output) weights/biases, zero-padded & pre-cast once.
    wcat_l, bcat_l = [], []
    for (w, b) in [params["beginning"]] + list(params["middle"]):
        wh = pad2(w[:, :layer_size], D_act, D_act)
        wo = pad2(w[:, layer_size:], D_act, D_out)
        wcat_l.append(jnp.concatenate([wh, wo], axis=1))
        bh = pad2(b[:, :layer_size], 1, D_act)
        bo = pad2(b[:, layer_size:], 1, D_out)
        bcat_l.append(jnp.concatenate([bh, bo], axis=1))
    wcat = jnp.stack(wcat_l).astype(compute_dtype)     # (L, D_act, D_cat)
    bcat = jnp.stack(bcat_l)                           # (L, 1, D_cat)  f32
    we, be = params["end"]
    wend = pad2(we, D_act, D_out).astype(compute_dtype)  # (D_act, D_out)
    bend = pad2(be, 1, D_out)                            # (1, D_out)   f32

    x_p = jnp.pad(x, ((0, B_pad - B), (0, D_act - n_input)))

    # Explicit VMEM budget from the actual block sizes (double-buffered) + headroom.
    wbytes = jnp.dtype(compute_dtype).itemsize
    needed = (
        2 * TB * D_act * 4                        # x blocks
        + 2 * L * D_act * D_cat * wbytes          # combined weights
        + 2 * L * D_cat * 4                       # combined biases
        + 2 * D_act * D_out * wbytes + 2 * D_out * 4   # end weight/bias
        + 2 * L * TB * D_act * 4                  # hidden-activation output blocks
        + 2 * (L + 1) * TB * D_out * 4            # per-layer output blocks
        + 2 * TB * D_cat * 4                      # in-kernel accumulator/temporaries
    )
    vmem_limit = int(min(max(2 * needed, 8 * 2 ** 20), 64 * 2 ** 20))

    const3 = lambda i: (0, 0, 0)
    h_all, out_all = pl.pallas_call(
        partial(_fused_eager_net_kernel, L, D_act, compute_dtype),
        grid=(B_pad // TB,),
        in_specs=[
            pl.BlockSpec((TB, D_act), lambda i: (i, 0)),
            pl.BlockSpec((L, D_act, D_cat), const3),
            pl.BlockSpec((L, 1, D_cat), const3),
            pl.BlockSpec((D_act, D_out), lambda i: (0, 0)),
            pl.BlockSpec((1, D_out), lambda i: (0, 0)),
        ],
        out_specs=(
            pl.BlockSpec((L, TB, D_act), lambda i: (0, i, 0)),
            pl.BlockSpec((L + 1, TB, D_out), lambda i: (0, i, 0)),
        ),
        out_shape=(
            jax.ShapeDtypeStruct((L, B_pad, D_act), jnp.float32),
            jax.ShapeDtypeStruct((L + 1, B_pad, D_out), jnp.float32),
        ),
        compiler_params=pltpu.CompilerParams(
            dimension_semantics=("parallel",),
            vmem_limit_bytes=vmem_limit,
        ),
    )(x_p, wcat, bcat, wend, bend)

    # Narrow padded slabs make these final slices cheap; a consumer that can use
    # the padded slabs directly can skip them entirely.
    all_outputs = [out_all[l, :B, :n_output] for l in range(L + 1)]
    all_xs = [x] + [h_all[l, :B, :layer_size] for l in range(L)]
    return all_outputs, all_xs


def init_linear(key, in_f, out_f):
    """Deterministic init mimicking torch.nn.Linear (uniform(-1/sqrt(in), 1/sqrt(in)))."""
    kw, kb = jax.random.split(key)
    bound = 1.0 / (in_f ** 0.5)
    w = jax.random.uniform(kw, (in_f, out_f), jnp.float32, -bound, bound)
    b = jax.random.uniform(kb, (1, out_f), jnp.float32, -bound, bound)
    return w, b


def init_eager_net(key, n_input, n_output, n_layers, layer_size):
    keys = jax.random.split(key, n_layers + 2)
    return {
        "beginning": init_linear(keys[0], n_input, layer_size + n_output),
        "middle": [
            init_linear(keys[1 + i], layer_size, layer_size + n_output)
            for i in range(n_layers)
        ],
        "end": init_linear(keys[-1], layer_size, n_output),
    }


def eager_net_forward_ref(params, x, n_output, layer_size):
    """Pure-JAX reference for correctness checking."""
    def leaky(v):
        return jnp.where(v >= 0, v, NEG_SLOPE * v)

    all_outputs, all_xs = [], []
    wb, bb = params["beginning"]
    y = x @ wb + bb
    all_xs.append(x)
    x = leaky(y[:, :layer_size])
    all_outputs.append(y[:, layer_size:])
    for (wm, bm) in params["middle"]:
        y = x @ wm + bm
        all_xs.append(x)
        x = leaky(y[:, :layer_size])
        all_outputs.append(y[:, layer_size:])
    all_xs.append(x)
    we, be = params["end"]
    all_outputs.append(x @ we + be)
    return all_outputs, all_xs


if __name__ == "__main__":
    # Small shapes consistent with the module's forward (x is (batch, n_input)).
    # batch=32 -> 2 batch tiles, so the "parallel" grid axis is exercised.
    batch, n_input, n_output, n_layers, layer_size = 32, 16, 8, 2, 32

    key = jax.random.PRNGKey(0)
    pkey, xkey = jax.random.split(key)
    params = init_eager_net(pkey, n_input, n_output, n_layers, layer_size)
    x = jax.random.normal(xkey, (batch, n_input), jnp.float32)

    ref_outs, ref_xs = eager_net_forward_ref(params, x, n_output, layer_size)

    # Strict correctness check: f32 MXU operands.
    outs, xs = eager_net_forward(params, x, n_output, layer_size,
                                 compute_dtype=jnp.float32)
    outs = [jax.block_until_ready(o) for o in outs]
    xs = [jax.block_until_ready(v) for v in xs]
    assert len(outs) == n_layers + 2 and len(xs) == n_layers + 2
    for a, b in zip(outs, ref_outs):
        assert a.shape == b.shape and jnp.allclose(a, b, atol=1e-4, rtol=1e-4)
    for a, b in zip(xs, ref_xs):
        assert a.shape == b.shape and jnp.allclose(a, b, atol=1e-4, rtol=1e-4)

    # Default fast path: bf16 MXU operands (f32 accumulate + f32 epilogue).
    outs_bf, xs_bf = eager_net_forward(params, x, n_output, layer_size)
    outs_bf = [jax.block_until_ready(o) for o in outs_bf]
    xs_bf = [jax.block_until_ready(v) for v in xs_bf]
    for a, b in zip(outs_bf, ref_outs):
        assert a.shape == b.shape and jnp.allclose(a, b, atol=5e-2, rtol=5e-2)
    for a, b in zip(xs_bf, ref_xs):
        assert a.shape == b.shape and jnp.allclose(a, b, atol=5e-2, rtol=5e-2)

    print("KERNEL_OK")
</pallas_src>

<mosaic_0001>
module attributes {stable_mosaic.version = 11 : i64} {
  func.func @_fused_eager_net_kernel(%arg0: i32, %arg1: memref<16x128xf32, #tpu.memory_space<vmem>>, %arg2: memref<3x128x256xf32, #tpu.memory_space<vmem>>, %arg3: memref<3x1x256xf32, #tpu.memory_space<vmem>>, %arg4: memref<128x128xf32, #tpu.memory_space<vmem>>, %arg5: memref<1x128xf32, #tpu.memory_space<vmem>>, %arg6: memref<3x16x128xf32, #tpu.memory_space<vmem>>, %arg7: memref<4x16x128xf32, #tpu.memory_space<vmem>>) attributes {dimension_semantics = [#tpu.dimension_semantics<parallel>], iteration_bounds = array<i64: 2>, scalar_prefetch = 0 : i64, scratch_operands = 0 : i64, tpu.core_type = #tpu.core_type<tc>, window_params = [{transform_indices = @transform_0, window_bounds = array<i64: 16, 128>}, {pipeline_mode = #tpu.pipeline_mode<synchronous>, transform_indices = @transform_1, window_bounds = array<i64: 3, 128, 256>}, {pipeline_mode = #tpu.pipeline_mode<synchronous>, transform_indices = @transform_2, window_bounds = array<i64: 3, 1, 256>}, {pipeline_mode = #tpu.pipeline_mode<synchronous>, transform_indices = @transform_3, window_bounds = array<i64: 128, 128>}, {pipeline_mode = #tpu.pipeline_mode<synchronous>, transform_indices = @transform_4, window_bounds = array<i64: 1, 128>}, {transform_indices = @transform_5, window_bounds = array<i64: 3, 16, 128>}, {transform_indices = @transform_6, window_bounds = array<i64: 4, 16, 128>}]} {
    %c0 = arith.constant 0 : index
    %c0_0 = arith.constant 0 : index
    %0 = vector.load %arg1[%c0, %c0_0] : memref<16x128xf32, #tpu.memory_space<vmem>>, vector<16x128xf32>
    %c0_1 = arith.constant 0 : index
    %c0_2 = arith.constant 0 : index
    %c0_3 = arith.constant 0 : index
    %1 = vector.load %arg2[%c0_1, %c0_2, %c0_3] : memref<3x128x256xf32, #tpu.memory_space<vmem>>, vector<1x128x256xf32>
    %2 = vector.shape_cast %1 : vector<1x128x256xf32> to vector<128x256xf32>
    %cst = arith.constant dense<0.000000e+00> : vector<16x256xf32>
    %3 = tpu.matmul %0, %2, %cst {dimension_numbers = #tpu.dot_dimension_numbers<[1], [0], [0], [1], [0, 0, 1, 1], [], []>} : vector<16x128xf32>, vector<128x256xf32>, vector<16x256xf32> -> vector<16x256xf32>
    %c0_4 = arith.constant 0 : index
    %c0_5 = arith.constant 0 : index
    %c0_6 = arith.constant 0 : index
    %4 = vector.load %arg3[%c0_4, %c0_5, %c0_6] : memref<3x1x256xf32, #tpu.memory_space<vmem>>, vector<1x1x256xf32>
    %5 = vector.shape_cast %4 : vector<1x1x256xf32> to vector<1x256xf32>
    %6 = vector.broadcast %5 : vector<1x256xf32> to vector<16x256xf32>
    %7 = arith.addf %3, %6 : vector<16x256xf32>
    %8 = vector.extract_strided_slice %7 {offsets = [0, 128], sizes = [16, 128], strides = [1, 1]} : vector<16x256xf32> to vector<16x128xf32>
    %c0_7 = arith.constant 0 : index
    %c0_8 = arith.constant 0 : index
    %c0_9 = arith.constant 0 : index
    %9 = vector.load %arg7[%c0_7, %c0_8, %c0_9] : memref<4x16x128xf32, #tpu.memory_space<vmem>>, vector<1x16x128xf32>
    %10 = vector.shape_cast %9 : vector<1x16x128xf32> to vector<16x128xf32>
    %11 = vector.shape_cast %8 : vector<16x128xf32> to vector<1x16x128xf32>
    tpu.vector_store %arg7[%c0_7, %c0_8, %c0_9], %11 {strides = array<i32>} : memref<4x16x128xf32, #tpu.memory_space<vmem>>, vector<1x16x128xf32>,
    %12 = vector.extract_strided_slice %7 {offsets = [0, 0], sizes = [16, 128], strides = [1, 1]} : vector<16x256xf32> to vector<16x128xf32>
    %cst_10 = arith.constant 0.000000e+00 : f32
    %13 = vector.broadcast %cst_10 : f32 to vector<16x128xf32>
    %14 = arith.cmpf oge, %12, %13 : vector<16x128xf32>
    %cst_11 = arith.constant 0.00999999977 : f32
    %15 = vector.broadcast %cst_11 : f32 to vector<16x128xf32>
    %16 = arith.mulf %15, %12 : vector<16x128xf32>
    %17 = arith.select %14, %12, %16 : vector<16x128xi1>, vector<16x128xf32>
    %c0_12 = arith.constant 0 : index
    %c0_13 = arith.constant 0 : index
    %c0_14 = arith.constant 0 : index
    %18 = vector.load %arg6[%c0_12, %c0_13, %c0_14] : memref<3x16x128xf32, #tpu.memory_space<vmem>>, vector<1x16x128xf32>
    %19 = vector.shape_cast %18 : vector<1x16x128xf32> to vector<16x128xf32>
    %20 = vector.shape_cast %17 : vector<16x128xf32> to vector<1x16x128xf32>
    tpu.vector_store %arg6[%c0_12, %c0_13, %c0_14], %20 {strides = array<i32>} : memref<3x16x128xf32, #tpu.memory_space<vmem>>, vector<1x16x128xf32>,
    %c1 = arith.constant 1 : index
    %c0_15 = arith.constant 0 : index
    %c0_16 = arith.constant 0 : index
    %21 = vector.load %arg2[%c1, %c0_15, %c0_16] : memref<3x128x256xf32, #tpu.memory_space<vmem>>, vector<1x128x256xf32>
    %22 = vector.shape_cast %21 : vector<1x128x256xf32> to vector<128x256xf32>
    %cst_17 = arith.constant dense<0.000000e+00> : vector<16x256xf32>
    %23 = tpu.matmul %17, %22, %cst_17 {dimension_numbers = #tpu.dot_dimension_numbers<[1], [0], [0], [1], [0, 0, 1, 1], [], []>} : vector<16x128xf32>, vector<128x256xf32>, vector<16x256xf32> -> vector<16x256xf32>
    %c1_18 = arith.constant 1 : index
    %c0_19 = arith.constant 0 : index
    %c0_20 = arith.constant 0 : index
    %24 = vector.load %arg3[%c1_18, %c0_19, %c0_20] : memref<3x1x256xf32, #tpu.memory_space<vmem>>, vector<1x1x256xf32>
    %25 = vector.shape_cast %24 : vector<1x1x256xf32> to vector<1x256xf32>
    %26 = vector.broadcast %25 : vector<1x256xf32> to vector<16x256xf32>
    %27 = arith.addf %23, %26 : vector<16x256xf32>
    %28 = vector.extract_strided_slice %27 {offsets = [0, 128], sizes = [16, 128], strides = [1, 1]} : vector<16x256xf32> to vector<16x128xf32>
    %c1_21 = arith.constant 1 : index
    %c0_22 = arith.constant 0 : index
    %c0_23 = arith.constant 0 : index
    %29 = vector.load %arg7[%c1_21, %c0_22, %c0_23] : memref<4x16x128xf32, #tpu.memory_space<vmem>>, vector<1x16x128xf32>
    %30 = vector.shape_cast %29 : vector<1x16x128xf32> to vector<16x128xf32>
    %31 = vector.shape_cast %28 : vector<16x128xf32> to vector<1x16x128xf32>
    tpu.vector_store %arg7[%c1_21, %c0_22, %c0_23], %31 {strides = array<i32>} : memref<4x16x128xf32, #tpu.memory_space<vmem>>, vector<1x16x128xf32>,
    %32 = vector.extract_strided_slice %27 {offsets = [0, 0], sizes = [16, 128], strides = [1, 1]} : vector<16x256xf32> to vector<16x128xf32>
    %cst_24 = arith.constant 0.000000e+00 : f32
    %33 = vector.broadcast %cst_24 : f32 to vector<16x128xf32>
    %34 = arith.cmpf oge, %32, %33 : vector<16x128xf32>
    %cst_25 = arith.constant 0.00999999977 : f32
    %35 = vector.broadcast %cst_25 : f32 to vector<16x128xf32>
    %36 = arith.mulf %35, %32 : vector<16x128xf32>
    %37 = arith.select %34, %32, %36 : vector<16x128xi1>, vector<16x128xf32>
    %c1_26 = arith.constant 1 : index
    %c0_27 = arith.constant 0 : index
    %c0_28 = arith.constant 0 : index
    %38 = vector.load %arg6[%c1_26, %c0_27, %c0_28] : memref<3x16x128xf32, #tpu.memory_space<vmem>>, vector<1x16x128xf32>
    %39 = vector.shape_cast %38 : vector<1x16x128xf32> to vector<16x128xf32>
    %40 = vector.shape_cast %37 : vector<16x128xf32> to vector<1x16x128xf32>
    tpu.vector_store %arg6[%c1_26, %c0_27, %c0_28], %40 {strides = array<i32>} : memref<3x16x128xf32, #tpu.memory_space<vmem>>, vector<1x16x128xf32>,
    %c2 = arith.constant 2 : index
    %c0_29 = arith.constant 0 : index
    %c0_30 = arith.constant 0 : index
    %41 = vector.load %arg2[%c2, %c0_29, %c0_30] : memref<3x128x256xf32, #tpu.memory_space<vmem>>, vector<1x128x256xf32>
    %42 = vector.shape_cast %41 : vector<1x128x256xf32> to vector<128x256xf32>
    %cst_31 = arith.constant dense<0.000000e+00> : vector<16x256xf32>
    %43 = tpu.matmul %37, %42, %cst_31 {dimension_numbers = #tpu.dot_dimension_numbers<[1], [0], [0], [1], [0, 0, 1, 1], [], []>} : vector<16x128xf32>, vector<128x256xf32>, vector<16x256xf32> -> vector<16x256xf32>
    %c2_32 = arith.constant 2 : index
    %c0_33 = arith.constant 0 : index
    %c0_34 = arith.constant 0 : index
    %44 = vector.load %arg3[%c2_32, %c0_33, %c0_34] : memref<3x1x256xf32, #tpu.memory_space<vmem>>, vector<1x1x256xf32>
    %45 = vector.shape_cast %44 : vector<1x1x256xf32> to vector<1x256xf32>
    %46 = vector.broadcast %45 : vector<1x256xf32> to vector<16x256xf32>
    %47 = arith.addf %43, %46 : vector<16x256xf32>
    %48 = vector.extract_strided_slice %47 {offsets = [0, 128], sizes = [16, 128], strides = [1, 1]} : vector<16x256xf32> to vector<16x128xf32>
    %c2_35 = arith.constant 2 : index
    %c0_36 = arith.constant 0 : index
    %c0_37 = arith.constant 0 : index
    %49 = vector.load %arg7[%c2_35, %c0_36, %c0_37] : memref<4x16x128xf32, #tpu.memory_space<vmem>>, vector<1x16x128xf32>
    %50 = vector.shape_cast %49 : vector<1x16x128xf32> to vector<16x128xf32>
    %51 = vector.shape_cast %48 : vector<16x128xf32> to vector<1x16x128xf32>
    tpu.vector_store %arg7[%c2_35, %c0_36, %c0_37], %51 {strides = array<i32>} : memref<4x16x128xf32, #tpu.memory_space<vmem>>, vector<1x16x128xf32>,
    %52 = vector.extract_strided_slice %47 {offsets = [0, 0], sizes = [16, 128], strides = [1, 1]} : vector<16x256xf32> to vector<16x128xf32>
    %cst_38 = arith.constant 0.000000e+00 : f32
    %53 = vector.broadcast %cst_38 : f32 to vector<16x128xf32>
    %54 = arith.cmpf oge, %52, %53 : vector<16x128xf32>
    %cst_39 = arith.constant 0.00999999977 : f32
    %55 = vector.broadcast %cst_39 : f32 to vector<16x128xf32>
    %56 = arith.mulf %55, %52 : vector<16x128xf32>
    %57 = arith.select %54, %52, %56 : vector<16x128xi1>, vector<16x128xf32>
    %c2_40 = arith.constant 2 : index
    %c0_41 = arith.constant 0 : index
    %c0_42 = arith.constant 0 : index
    %58 = vector.load %arg6[%c2_40, %c0_41, %c0_42] : memref<3x16x128xf32, #tpu.memory_space<vmem>>, vector<1x16x128xf32>
    %59 = vector.shape_cast %58 : vector<1x16x128xf32> to vector<16x128xf32>
    %60 = vector.shape_cast %57 : vector<16x128xf32> to vector<1x16x128xf32>
    tpu.vector_store %arg6[%c2_40, %c0_41, %c0_42], %60 {strides = array<i32>} : memref<3x16x128xf32, #tpu.memory_space<vmem>>, vector<1x16x128xf32>,
    %c0_43 = arith.constant 0 : index
    %c0_44 = arith.constant 0 : index
    %61 = vector.load %arg4[%c0_43, %c0_44] : memref<128x128xf32, #tpu.memory_space<vmem>>, vector<128x128xf32>
    %cst_45 = arith.constant dense<0.000000e+00> : vector<16x128xf32>
    %62 = tpu.matmul %57, %61, %cst_45 {dimension_numbers = #tpu.dot_dimension_numbers<[1], [0], [0], [1], [0, 0, 1, 1], [], []>} : vector<16x128xf32>, vector<128x128xf32>, vector<16x128xf32> -> vector<16x128xf32>
    %c0_46 = arith.constant 0 : index
    %c0_47 = arith.constant 0 : index
    %63 = vector.load %arg5[%c0_46, %c0_47] : memref<1x128xf32, #tpu.memory_space<vmem>>, vector<1x128xf32>
    %64 = vector.broadcast %63 : vector<1x128xf32> to vector<16x128xf32>
    %65 = arith.addf %62, %64 : vector<16x128xf32>
    %c3 = arith.constant 3 : index
    %c0_48 = arith.constant 0 : index
    %c0_49 = arith.constant 0 : index
    %66 = vector.load %arg7[%c3, %c0_48, %c0_49] : memref<4x16x128xf32, #tpu.memory_space<vmem>>, vector<1x16x128xf32>
    %67 = vector.shape_cast %66 : vector<1x16x128xf32> to vector<16x128xf32>
    %68 = vector.shape_cast %65 : vector<16x128xf32> to vector<1x16x128xf32>
    tpu.vector_store %arg7[%c3, %c0_48, %c0_49], %68 {strides = array<i32>} : memref<4x16x128xf32, #tpu.memory_space<vmem>>, vector<1x16x128xf32>,
    return
  }
  func.func @transform_0(%arg0: i32) -> (i32, i32) {
    %c0_i32 = arith.constant 0 : i32
    %c0_i32_0 = arith.constant 0 : i32
    return %arg0, %c0_i32 : i32, i32
  }
  func.func @transform_1(%arg0: i32) -> (i32, i32, i32) {
    %c0_i32 = arith.constant 0 : i32
    %c0_i32_0 = arith.constant 0 : i32
    %c0_i32_1 = arith.constant 0 : i32
    %c0_i32_2 = arith.constant 0 : i32
    return %c0_i32, %c0_i32_0, %c0_i32_1 : i32, i32, i32
  }
  func.func @transform_2(%arg0: i32) -> (i32, i32, i32) {
    %c0_i32 = arith.constant 0 : i32
    %c0_i32_0 = arith.constant 0 : i32
    %c0_i32_1 = arith.constant 0 : i32
    %c0_i32_2 = arith.constant 0 : i32
    return %c0_i32, %c0_i32_0, %c0_i32_1 : i32, i32, i32
  }
  func.func @transform_3(%arg0: i32) -> (i32, i32) {
    %c0_i32 = arith.constant 0 : i32
    %c0_i32_0 = arith.constant 0 : i32
    %c0_i32_1 = arith.constant 0 : i32
    return %c0_i32, %c0_i32_0 : i32, i32
  }
  func.func @transform_4(%arg0: i32) -> (i32, i32) {
    %c0_i32 = arith.constant 0 : i32
    %c0_i32_0 = arith.constant 0 : i32
    %c0_i32_1 = arith.constant 0 : i32
    return %c0_i32, %c0_i32_0 : i32, i32
  }
  func.func @transform_5(%arg0: i32) -> (i32, i32, i32) {
    %c0_i32 = arith.constant 0 : i32
    %c0_i32_0 = arith.constant 0 : i32
    %c0_i32_1 = arith.constant 0 : i32
    return %c0_i32, %arg0, %c0_i32_0 : i32, i32, i32
  }
  func.func @transform_6(%arg0: i32) -> (i32, i32, i32) {
    %c0_i32 = arith.constant 0 : i32
    %c0_i32_0 = arith.constant 0 : i32
    %c0_i32_1 = arith.constant 0 : i32
    return %c0_i32, %arg0, %c0_i32_0 : i32, i32, i32
  }
}

</mosaic_0001>

<bundles_post_ra>
// kernel: tpu_custom_call.1
= control target key start
LH: loop header
LB: loop body
LE: loop exit
PB: predicated region body
PF: predicated region fallthrough
CT: control target
= control target key end

     0   :  { %12 = vsyncpa [#allocation3], 0  ;;  %s1847_s0 = inlined_call_operand.hbm [shape: f32[32,128], index: 0, kind: input, shape index: {}]   ;;  %s1848_s1 = inlined_call_operand.hbm [shape: f32[3,128,256], index: 1, kind: input, shape index: {}]   ;;  %s1849_s2 = inlined_call_operand.vmem [shape: f32[3,1,256], index: 2, kind: input, shape index: {}]   ;;  %s1850_s3 = inlined_call_operand.hbm [shape: f32[128,128], index: 3, kind: input, shape index: {}]   ;;  %s1851_s4 = inlined_call_operand.vmem [shape: f32[1,128], index: 4, kind: input, shape index: {}]   ;;  %s1852_s5 = inlined_call_operand.hbm [shape: f32[3,32,128], index: 5, kind: output, shape index: {0}]   ;;  %s1853_s6 = inlined_call_operand.hbm [shape: f32[4,32,128], index: 6, kind: output, shape index: {1}]  }
   0x1   :  { %14 = vsyncpa [#allocation3 + $0x1], 0 }
   0x2   :  { %15 = vsyncpa [#allocation6], 0 }
   0x3   :  { %16 = vsyncpa [#allocation4], 0 }
   0x4   :  { %18 = vsyncpa [#allocation4 + $0x1], 0 }
   0x5   :  { %19 = vsyncpa [#allocation10], 0 }
   0x6   :  { %21 = vsyncpa [#allocation10 + $0x1], 0  ;;  %s1546_s21 = smov 0   ;;  %s1548_s22 = smov 0  }
   0x7   :  { %s1550_s23 = smov 0   ;;  %s1552_s24 = smov 0  }
   0x8 LB: > { %s1567_s25 = sadd.s32 4294967295, %s1487_s24   ;;  %s1034_s26 = sadd.s32 4294967294, %s1487_s24   ;;  %s1487_s24 = sphi %s1552_s24, %s1873_s24   ;;  %s1483_s23 = sphi %s1550_s23, %s1872_s23   ;;  %s1479_s22 = sphi %s1548_s22, %s1871_s22   ;;  %s1475_s21 = sphi %s1546_s21, %s1870_s21  }
   0x9   : > { %p47_p0 = scmp.ne.s32.totalorder %s1479_s22, %s1475_s21  ;;  %p1854_p1 = scmp.eq.s32.totalorder %s1567_s25, 0 }
   0xa   : > { %p161_p3 = scmp.eq.s32.totalorder %s1034_s26, 1  ;;  %p1035_p5 = scmp.ge.s32.totalorder %s1487_s24, 1 }
   0xb   : > { %p1576_p4 = por %p1854_p1, %p47_p0  ;;  %p194_p7 = scmp.lt.s32.totalorder %s1487_s24, 3 }
   0xc   : > { %p1581_p6 = por %p161_p3, %p47_p0  ;;  %s1489_s30 = smov [#allocation5]  }
   0xd   : > { %s1857_s27 = scalar_select %p1576_p4, 1, 0 }
   0xe   : > { %s1858_s28 = scalar_select %p1581_p6, 1, 0 }
   0xf   : > { %p1586_p8 = pnand %p1035_p5, %p194_p7  ;;  %s206_s7 = sshll.u32 %s1489_s30, 4  ;;  %s1590_s7 = int_to_ptr.vmem [resolvable:$true] %s206_s7 }
  0x10   : > { %s1490_s9 = smov [#allocation7]   ;;  %s1355_s13 = scalar_lea.hbm %s1848_s1, 12288 }
  0x11   : > { %p1278_p9 = pneg %p1586_p8  ;;  %s222_s10 = sshll.u32 %s1490_s9, 4  ;;  %s1601_s10 = int_to_ptr.vmem [resolvable:$true] %s222_s10 }
  0x12   : > { %p1356_p12 = scmp.ne.s32.totalorder %s1848_s1, %s1355_s13  ;;  %p1362_p5 = scmp.lt.u32.totalorder %s1355_s13, %s1848_s1 }
  0x13   : > { %p1597_p11 = pnand %p1278_p9, %p1854_p1 }
  0x15   : > { %p1357_p13 = pneg %p1597_p11 }
  0x17   : > { %p1358_p0 = pnand %p1357_p13, %p1356_p12 }
  0x19   : > { %p1359_p3 = pneg %p1358_p0 }
  0x1b   : > { %p1364_p7 = pnand %p1362_p5, %p1359_p3 }
  0x1d   : > { %1367 = shalt.err (!%p1364_p7)
}
  0x1e   : > { %s1368_s18 = scalar_lea.vmem %s1590_s7, 12288  ;;  %p1376_p2 = scmp.lt.s32.totalorder %s1590_s7, %s1590_s7 }
  0x1f   : > { %p1369_p9 = scmp.ne.s32.totalorder %s1590_s7, %s1368_s18  ;;  %p1377_p12 = scmp.lt.s32.totalorder %s1368_s18, %s1368_s18 }
  0x21   : > { %p1371_p10 = pnand %p1369_p9, %p1357_p13  ;;  %p1378_p0 = por %p1377_p12, %p1376_p2 }
  0x23   : > { %p1372_p1 = pneg %p1371_p10 }
  0x25   : > { %p1379_p6 = pnand %p1378_p0, %p1372_p1 }
  0x27   : > { %1382 = shalt.err (!%p1379_p6)
}
  0x28   : > { %s1491_s19 = smov 256   ;;  %s1492_s20 = smov 16  }
  0x29   : > { %1281 = dma.hbm_to_vmem [thread:$0]  (!%p1597_p11), %s1848_s1, 12288, %s1590_s7, [#allocation6], %s1491_s19, %s1491_s19, %s1492_s20  }
  0x2a   : > { %s1383_s12 = scalar_lea.hbm %s1850_s3, 2048 }
  0x2b   : > { %p1384_p2 = scmp.ne.s32.totalorder %s1850_s3, %s1383_s12  ;;  %p1390_p10 = scmp.lt.u32.totalorder %s1383_s12, %s1850_s3 }
  0x2d   : > { %p1386_p1 = pnand %p1384_p2, %p1357_p13 }
  0x2f   : > { %p1387_p6 = pneg %p1386_p1 }
  0x31   : > { %p1392_p3 = pnand %p1390_p10, %p1387_p6 }
  0x33   : > { %1395 = shalt.err (!%p1392_p3)
}
  0x34   : > { %s1396_s7 = scalar_lea.vmem %s1601_s10, 2048  ;;  %p1404_p12 = scmp.lt.s32.totalorder %s1601_s10, %s1601_s10 }
  0x35   : > { %p1397_p5 = scmp.ne.s32.totalorder %s1601_s10, %s1396_s7  ;;  %p1405_p0 = scmp.lt.s32.totalorder %s1396_s7, %s1396_s7 }
  0x37   : > { %p1399_p7 = pnand %p1397_p5, %p1357_p13  ;;  %p1406_p2 = por %p1405_p0, %p1404_p12 }
  0x39   : > { %p1400_p9 = pneg %p1399_p7 }
  0x3b   : > { %p1407_p1 = pnand %p1406_p2, %p1400_p9 }
  0x3d   : > { %1410 = shalt.err (!%p1407_p1)
}
  0x3e   : > { %s1493_s17 = smov 128   ;;  %s1494_s18 = smov 8  }
  0x3f   : > { %1284 = dma.hbm_to_vmem [thread:$0]  (!%p1597_p11), %s1850_s3, 2048, %s1601_s10, [#allocation6], %s1493_s17, %s1493_s17, %s1494_s18  }
  0x40   : > { %s1659_s26 = sadd.s32 1, %s1487_s24   ;;  %s34_s9 = sadd.s32 1, %s1483_s23 }
  0x41   : > { %s31_s30 = ssub.s32 %s1487_s24, %s1659_s26  ;;  %p41_p6 = scmp.ne.s32.totalorder %s1483_s23, %s1479_s22 }
  0x42   : > { %p32_p13 = scmp.eq.s32.totalorder %s31_s30, 0  ;;  %p42_p10 = scmp.eq.s32.totalorder %s1487_s24, 0 }
  0x43   : > { %p1861_p5 = scmp.eq.s32.totalorder %s1567_s25, 1  ;;  %p1298_p9 = scmp.lt.s32.totalorder %s1487_s24, 2 }
  0x44   : > { %s1668_s11 = scalar_select %p32_p13, %s1483_s23, %s34_s9  }
  0x45   : > { %p43_p3 = por %p42_p10, %p41_p6  ;;  %p1672_p7 = por %p1861_p5, %p41_p6 }
  0x46   : > { %s239_s12 = sand.u32 1, %s1483_s23   ;;  %s1067_s10 = sshll.u32 %s1487_s24, 8 }
  0x47   : > { %s1862_s8 = scalar_select %p1672_p7, 1, 0 }
  0x48   : > { %s1039_s13 = sshll.u32 %s239_s12, 4  ;;  %s1682_s16 = scalar_lea.hbm %s1847_s0, %s1067_s10 }
  0x49   : > { %s243_s7 = scalar_lea.vmem [#allocation2], %s1039_s13  ;;  %p1686_p11 = pnand %p1298_p9, %p43_p3 }
  0x4a   : > { %s250_s19 = sshll.u32 %s243_s7, 4  ;;  %s1690_s30 = scalar_lea.sflag [#allocation3], %s239_s12  ;;  %s1684_s19 = int_to_ptr.vmem [resolvable:$true] %s250_s19 }
  0x4b   : > { %s1411_s9 = scalar_lea.hbm %s1682_s16, 256  ;;  %p1413_p0 = pneg %p1686_p11 }
  0x4c   : > { %p1412_p12 = scmp.ne.s32.totalorder %s1682_s16, %s1411_s9  ;;  %s1416_s14 = scalar_lea.hbm %s1847_s0, 512 }
  0x4d   : > { %p1417_p13 = scmp.lt.u32.totalorder %s1682_s16, %s1847_s0  ;;  %p1418_p6 = scmp.lt.u32.totalorder %s1416_s14, %s1411_s9 }
  0x4e   : > { %p1414_p2 = pnand %p1413_p0, %p1412_p12  ;;  %p1420_p3 = scmp.lt.u32.totalorder %s1411_s9, %s1682_s16 }
  0x4f   : > { %p1419_p10 = por %p1418_p6, %p1417_p13 }
  0x50   : > { %p1415_p1 = pneg %p1414_p2 }
  0x51   : > { %p1421_p5 = por %p1420_p3, %p1419_p10 }
  0x53   : > { %p1422_p9 = pnand %p1421_p5, %p1415_p1 }
  0x55   : > { %1425 = shalt.err (!%p1422_p9)
}
  0x56   : > { %s1426_s12 = scalar_lea.vmem %s1684_s19, 256  ;;  %s1495_s13 = smov [#allocation2]  }
  0x57   : > { %p1427_p12 = scmp.ne.s32.totalorder %s1684_s19, %s1426_s12  ;;  %s1431_s10 = sshll.u32 %s1495_s13, 4  ;;  %s1432_s10 = int_to_ptr.vmem [resolvable:$false] %s1431_s10 }
  0x58   : > { %s1433_s15 = scalar_lea.vmem %s1432_s10, 512  ;;  %p1434_p4 = scmp.lt.s32.totalorder %s1684_s19, %s1432_s10 }
  0x59   : > { %p1429_p2 = pnand %p1427_p12, %p1413_p0  ;;  %p1435_p13 = scmp.lt.s32.totalorder %s1433_s15, %s1426_s12 }
  0x5b   : > { %p1430_p7 = pneg %p1429_p2  ;;  %p1436_p6 = por %p1435_p13, %p1434_p4 }
  0x5d   : > { %p1437_p10 = pnand %p1436_p6, %p1430_p7 }
  0x5f   : > { %1440 = shalt.err (!%p1437_p10)
}
  0x60   : > { %1288 = dma.hbm_to_vmem [thread:$0]  (!%p1686_p11), %s1682_s16, 256, %s1684_s19, %s1690_s30, %s1493_s17, %s1493_s17, %s1494_s18  }
  0x61   : > { %262 = sbr.rel (%p1586_p8) target bundleno = 1034 (0x40a), region = 40  ;;  %s1724_s9 = sand.u32 (!%p1586_p8), 1, %s1479_s22  }
  0x62   : > { %s1043_s14 = sshll.u32 (!%p1586_p8), %s1724_s9, 4  ;;  %s265_s7 = scalar_lea.sflag (!%p1586_p8), [#allocation3], %s1724_s9 }
  0x63   : > { %s1728_s12 = scalar_lea.vmem (!%p1586_p8), [#allocation2], %s1043_s14  ;;  %p1864_p4 = scmp.ne.s32.totalorder (!%p1586_p8), %s1857_s27, 0 }
  0x68   : > { %1458 = dma.done.wait (%p1864_p4), %s265_s7, 256  }
  0x69   : > { %1460 = vsyncadd (%p1864_p4), %s265_s7, 4294967040  ;;  %p1865_p7 = scmp.eq.s32.totalorder %s1567_s25, 0 }
  0x6b   : > { %1462 = dma.done.wait (%p1865_p7), [#allocation6], 14336   ;;  %p1866_p8 = pmov %p1865_p7 }
  0x6c   : > { %v1496_v0 = vmov 0.0   ;;  %v316_v1 = vld [vmem:[#allocation5 + $0x8] sm:$0xff]  ;;  %v318_v2 = vld [vmem:[#allocation5 + $0x18] sm:$0xff]  ;;  %v315_v3 = vld [vmem:[#allocation5] sm:$0xff]  ;;  %s1046_s17 = sshll.u32 %s1724_s9, 6  ;;  %s1251_s18 = smul.u32 48, %s1724_s9 }
  0x6d   : > { %1464 = vsyncadd (%p1866_p8), [#allocation6], 4294952960  ;;  %423 = vmatprep.mubr.f32.mxu0 %v1496_v0  ;;  %556 = vmatprep.mubr.f32.mxu1 %v1496_v0  ;;  %v1123_v4 = vpack.c.bf16 %v318_v2, %v316_v1  ;;  %v317_v5 = vld [vmem:[#allocation5 + $0x10] sm:$0xff]  ;;  %v320_v6 = vld [vmem:[#allocation5 + $0x28] sm:$0xff]  ;;  %s1755_s16 = scalar_lea.vmem [#allocation9], %s1046_s17  ;;  %s818_s7 = scalar_lea.sflag [#allocation4], %s1724_s9 }
  0x6e   : > { %v322_v7 = vld [vmem:[#allocation5 + $0x38] sm:$0xff]  ;;  %v1125_v8 = vpack.c.bf16 %v317_v5, %v315_v3  ;;  %v319_v10 = vld [vmem:[#allocation5 + $0x20] sm:$0xff]  ;;  %v321_v11 = vld [vmem:[#allocation5 + $0x30] sm:$0xff]  ;;  %s1758_s19 = scalar_lea.vmem [#allocation8], %s1251_s18 }
  0x6f   : > { %v1127_v9 = vpack.c.bf16 %v322_v7, %v320_v6  ;;  %v324_v12 = vld [vmem:[#allocation5 + $0x48] sm:$0xff]  ;;  %1124 = vmatprep.subr.bf16.mxu0 %v1123_v4  ;;  %v326_v13 = vld [vmem:[#allocation5 + $0x58] sm:$0xff]  ;;  %v1129_v14 = vpack.c.bf16 %v321_v11, %v319_v10  ;;  %v323_v16 = vld [vmem:[#allocation5 + $0x40] sm:$0xff] }
  0x70   : > { %1126 = vmatpush1.bf16.msra.mxu0 %v1125_v8  ;;  %v1131_v15 = vpack.c.bf16 %v326_v13, %v324_v12  ;;  %v325_v17 = vld [vmem:[#allocation5 + $0x50] sm:$0xff]  ;;  %v328_v18 = vld [vmem:[#allocation5 + $0x68] sm:$0xff]  ;;  %v330_v19 = vld [vmem:[#allocation5 + $0x78] sm:$0xff] }
  0x71   : > { %1128 = vmatprep.subr.bf16.mxu0 %v1127_v9  ;;  %v1133_v20 = vpack.c.bf16 %v325_v17, %v323_v16  ;;  %v1135_v21 = vpack.c.bf16 %v330_v19, %v328_v18  ;;  %v327_v22 = vld [vmem:[#allocation5 + $0x60] sm:$0xff]  ;;  %v329_v23 = vld [vmem:[#allocation5 + $0x70] sm:$0xff]  ;;  %v332_v24 = vld [vmem:[#allocation5 + $0x88] sm:$0xff] }
  0x72   : > { %v334_v25 = vld [vmem:[#allocation5 + $0x98] sm:$0xff]  ;;  %v331_v26 = vld [vmem:[#allocation5 + $0x80] sm:$0xff]  ;;  %v333_v27 = vld [vmem:[#allocation5 + $0x90] sm:$0xff]  ;;  %v1137_v30 = vpack.c.bf16 %v329_v23, %v327_v22 }
  0x73   : > { %v448_v28 = vld [vmem:[#allocation5 + $0x108] sm:$0xff]  ;;  %v450_v29 = vld [vmem:[#allocation5 + $0x118] sm:$0xff]  ;;  %v447_v33 = vld [vmem:[#allocation5 + $0x100] sm:$0xff]  ;;  %v1139_v36 = vpack.c.bf16 %v334_v25, %v332_v24  ;;  %v1141_v46 = vpack.c.bf16 %v333_v27, %v331_v26 }
  0x74   : > { %1130 = vmatpush1.bf16.msra.mxu0 %v1129_v14  ;;  %v336_v31 = vld [vmem:[#allocation5 + $0xa8] sm:$0xff]  ;;  %v1155_v32 = vpack.c.bf16 %v450_v29, %v448_v28  ;;  %v449_v34 = vld [vmem:[#allocation5 + $0x110] sm:$0xff]  ;;  %v454_v38 = vld [vmem:[#allocation5 + $0x138] sm:$0xff] }
  0x75   : > { %1132 = vmatprep.subr.bf16.mxu0 %v1131_v15  ;;  %v452_v35 = vld [vmem:[#allocation5 + $0x128] sm:$0xff]  ;;  %v1157_v37 = vpack.c.bf16 %v449_v34, %v447_v33  ;;  %v451_v39 = vld [vmem:[#allocation5 + $0x120] sm:$0xff]  ;;  %v453_v40 = vld [vmem:[#allocation5 + $0x130] sm:$0xff] }
  0x76   : > { %v338_v41 = vld [vmem:[#allocation5 + $0xb8] sm:$0xff]  ;;  %1156 = vmatprep.subr.bf16.mxu1 %v1155_v32  ;;  %v1159_v42 = vpack.c.bf16 %v454_v38, %v452_v35  ;;  %v456_v43 = vld [vmem:[#allocation5 + $0x148] sm:$0xff]  ;;  %v1161_v45 = vpack.c.bf16 %v453_v40, %v451_v39  ;;  %v335_v47 = vld [vmem:[#allocation5 + $0xa0] sm:$0xff] }
  0x77   : > { %v458_v44 = vld [vmem:[#allocation5 + $0x158] sm:$0xff]  ;;  %1158 = vmatpush1.bf16.msra.mxu1 %v1157_v37  ;;  %v455_v49 = vld [vmem:[#allocation5 + $0x140] sm:$0xff]  ;;  %v457_v50 = vld [vmem:[#allocation5 + $0x150] sm:$0xff]  ;;  %v1143_v51 = vpack.c.bf16 %v338_v41, %v336_v31 }
  0x78   : > { %1134 = vmatpush1.bf16.msra.mxu0 %v1133_v20  ;;  %1160 = vmatprep.subr.bf16.mxu1 %v1159_v42  ;;  %v1163_v48 = vpack.c.bf16 %v458_v44, %v456_v43  ;;  %v337_v52 = vld [vmem:[#allocation5 + $0xb0] sm:$0xff]  ;;  %v460_v53 = vld [vmem:[#allocation5 + $0x168] sm:$0xff]  ;;  %v462_v54 = vld [vmem:[#allocation5 + $0x178] sm:$0xff]  ;;  %v1165_v57 = vpack.c.bf16 %v457_v50, %v455_v49 }
  0x79   : > { %1136 = vmatprep.subr.bf16.mxu0 %v1135_v21  ;;  %v340_v55 = vld [vmem:[#allocation5 + $0xc8] sm:$0xff]  ;;  %v342_v56 = vld [vmem:[#allocation5 + $0xd8] sm:$0xff]  ;;  %v1145_v58 = vpack.c.bf16 %v337_v52, %v335_v47  ;;  %v339_v59 = vld [vmem:[#allocation5 + $0xc0] sm:$0xff]  ;;  %v1167_v60 = vpack.c.bf16 %v462_v54, %v460_v53 }
  0x7a   : > { %v459_v61 = vld [vmem:[#allocation5 + $0x160] sm:$0xff]  ;;  %v461_v62 = vld [vmem:[#allocation5 + $0x170] sm:$0xff]  ;;  %v1147_v63 = vpack.c.bf16 %v342_v56, %v340_v55  ;;  %v464_v2 = vld [vmem:[#allocation5 + $0x188] sm:$0xff] }
  0x7b   : > { %1162 = vmatpush1.bf16.msra.mxu1 %v1161_v45  ;;  %v341_v1 = vld [vmem:[#allocation5 + $0xd0] sm:$0xff]  ;;  %v466_v3 = vld [vmem:[#allocation5 + $0x198] sm:$0xff]  ;;  %v344_v4 = vld [vmem:[#allocation5 + $0xe8] sm:$0xff]  ;;  %v1169_v6 = vpack.c.bf16 %v461_v62, %v459_v61 }
  0x7c   : > { %1138 = vmatpush1.bf16.msra.mxu0 %v1137_v30  ;;  %1164 = vmatprep.subr.bf16.mxu1 %v1163_v48  ;;  %v346_v5 = vld [vmem:[#allocation5 + $0xf8] sm:$0xff]  ;;  %v1149_v7 = vpack.c.bf16 %v341_v1, %v339_v59  ;;  %v343_v8 = vld [vmem:[#allocation5 + $0xe0] sm:$0xff]  ;;  %v1171_v9 = vpack.c.bf16 %v466_v3, %v464_v2  ;;  %v465_v11 = vld [vmem:[#allocation5 + $0x190] sm:$0xff] }
  0x7d   : > { %1140 = vmatprep.subr.bf16.mxu0 %v1139_v36  ;;  %v463_v10 = vld [vmem:[#allocation5 + $0x180] sm:$0xff]  ;;  %v1151_v12 = vpack.c.bf16 %v346_v5, %v344_v4  ;;  %v345_v13 = vld [vmem:[#allocation5 + $0xf0] sm:$0xff]  ;;  %v468_v14 = vld [vmem:[#allocation5 + $0x1a8] sm:$0xff] }
  0x7e   : > { %v470_v15 = vld [vmem:[#allocation5 + $0x1b8] sm:$0xff]  ;;  %v1173_v16 = vpack.c.bf16 %v465_v11, %v463_v10  ;;  %v1153_v17 = vpack.c.bf16 %v345_v13, %v343_v8  ;;  %v467_v19 = vld [vmem:[#allocation5 + $0x1a0] sm:$0xff]  ;;  %v469_v20 = vld [vmem:[#allocation5 + $0x1b0] sm:$0xff] }
  0x7f   : > { %1166 = vmatpush1.bf16.msra.mxu1 %v1165_v57  ;;  %v1175_v18 = vpack.c.bf16 %v470_v15, %v468_v14  ;;  %v472_v21 = vld [vmem:[#allocation5 + $0x1c8] sm:$0xff]  ;;  %v474_v22 = vld [vmem:[#allocation5 + $0x1d8] sm:$0xff]  ;;  %v1177_v23 = vpack.c.bf16 %v469_v20, %v467_v19  ;;  %v313_v24 = vld [vmem:[%s1728_s12] sm:$0xff]  ;;  %v349_v15 = vlaneseq }
  0x80   : > { %1142 = vmatpush1.bf16.msra.mxu0 %v1141_v46  ;;  %1168 = vmatprep.subr.bf16.mxu1 %v1167_v60  ;;  %v1179_v25 = vpack.c.bf16 %v474_v22, %v472_v21  ;;  %v471_v26 = vld [vmem:[#allocation5 + $0x1c0] sm:$0xff]  ;;  %v473_v27 = vld [vmem:[#allocation5 + $0x1d0] sm:$0xff]  ;;  %v314_v29 = vld [vmem:[%s1728_s12 + $0x8] sm:$0xff]  ;;  %s823_s12 = scalar_lea.sflag [#allocation10], %s1724_s9 }
  0x81   : > { %1144 = vmatprep.subr.bf16.mxu0 %v1143_v51  ;;  %v1181_v28 = vpack.c.bf16 %v473_v27, %v471_v26  ;;  %v476_v30 = vld [vmem:[#allocation5 + $0x1e8] sm:$0xff]  ;;  %v478_v31 = vld [vmem:[#allocation5 + $0x1f8] sm:$0xff]  ;;  %v475_v33 = vld [vmem:[#allocation5 + $0x1e0] sm:$0xff] }
  0x82   : > { %v1183_v32 = vpack.c.bf16 %v478_v31, %v476_v30  ;;  %v477_v34 = vld [vmem:[#allocation5 + $0x1f0] sm:$0xff]  ;;  %v583_v36 = vld [vmem:[#allocation5 + $0x208] sm:$0xff]  ;;  %v585_v37 = vld [vmem:[#allocation5 + $0x218] sm:$0xff] }
  0x83   : > { %1170 = vmatpush1.bf16.msra.mxu1 %v1169_v6  ;;  %v1185_v35 = vpack.c.bf16 %v477_v34, %v475_v33  ;;  %v582_v38 = vld [vmem:[#allocation5 + $0x200] sm:$0xff]  ;;  %v1187_v39 = vpack.c.bf16 %v585_v37, %v583_v36  ;;  %v584_v40 = vld [vmem:[#allocation5 + $0x210] sm:$0xff]  ;;  %v587_v41 = vld [vmem:[#allocation5 + $0x228] sm:$0xff] }
  0x84   : > { %1146 = vmatpush1.bf16.msra.mxu0 %v1145_v58  ;;  %1172 = vmatprep.subr.bf16.mxu1 %v1171_v9  ;;  %v589_v42 = vld [vmem:[#allocation5 + $0x238] sm:$0xff]  ;;  %v1189_v43 = vpack.c.bf16 %v584_v40, %v582_v38  ;;  %v586_v45 = vld [vmem:[#allocation5 + $0x220] sm:$0xff]  ;;  %v588_v46 = vld [vmem:[#allocation5 + $0x230] sm:$0xff] }
  0x85   : > { %1148 = vmatprep.subr.bf16.mxu0 %v1147_v63  ;;  %v1191_v44 = vpack.c.bf16 %v589_v42, %v587_v41  ;;  %v591_v47 = vld [vmem:[#allocation5 + $0x248] sm:$0xff]  ;;  %v593_v48 = vld [vmem:[#allocation5 + $0x258] sm:$0xff]  ;;  %v1193_v49 = vpack.c.bf16 %v588_v46, %v586_v45  ;;  %v590_v51 = vld [vmem:[#allocation5 + $0x240] sm:$0xff] }
  0x86   : > { %v1195_v50 = vpack.c.bf16 %v593_v48, %v591_v47  ;;  %v592_v52 = vld [vmem:[#allocation5 + $0x250] sm:$0xff]  ;;  %v595_v53 = vld [vmem:[#allocation5 + $0x268] sm:$0xff]  ;;  %v597_v54 = vld [vmem:[#allocation5 + $0x278] sm:$0xff] }
  0x87   : > { %1174 = vmatpush1.bf16.msra.mxu1 %v1173_v16  ;;  %v1197_v55 = vpack.c.bf16 %v592_v52, %v590_v51  ;;  %v1199_v56 = vpack.c.bf16 %v597_v54, %v595_v53  ;;  %v594_v57 = vld [vmem:[#allocation5 + $0x260] sm:$0xff]  ;;  %v596_v58 = vld [vmem:[#allocation5 + $0x270] sm:$0xff]  ;;  %v599_v59 = vld [vmem:[#allocation5 + $0x288] sm:$0xff]  ;;  %v350_v16 = vshrl.u32 %v349_v15, 7 }
  0x88   : > { %1150 = vmatpush1.bf16.msra.mxu0 %v1149_v7  ;;  %1176 = vmatprep.subr.bf16.mxu1 %v1175_v18  ;;  %v601_v60 = vld [vmem:[#allocation5 + $0x298] sm:$0xff]  ;;  %v1201_v61 = vpack.c.bf16 %v596_v58, %v594_v57  ;;  %v598_v63 = vld [vmem:[#allocation5 + $0x280] sm:$0xff]  ;;  %v600_v1 = vld [vmem:[#allocation5 + $0x290] sm:$0xff] }
  0x89   : > { %1152 = vmatprep.subr.bf16.mxu0 %v1151_v12  ;;  %v1203_v62 = vpack.c.bf16 %v601_v60, %v599_v59  ;;  %v603_v2 = vld [vmem:[#allocation5 + $0x2a8] sm:$0xff]  ;;  %v605_v3 = vld [vmem:[#allocation5 + $0x2b8] sm:$0xff]  ;;  %v1205_v4 = vpack.c.bf16 %v600_v1, %v598_v63  ;;  %v602_v6 = vld [vmem:[#allocation5 + $0x2a0] sm:$0xff]  ;;  %v1749_v19 = vsub.s32 1, %v350_v16 }
  0x8a   : > { %v1207_v5 = vpack.c.bf16 %v605_v3, %v603_v2  ;;  %v604_v7 = vld [vmem:[#allocation5 + $0x2b0] sm:$0xff]  ;;  %v607_v8 = vld [vmem:[#allocation5 + $0x2c8] sm:$0xff]  ;;  %v609_v9 = vld [vmem:[#allocation5 + $0x2d8] sm:$0xff] }
  0x8b   : > { %1178 = vmatpush1.bf16.msra.mxu1 %v1177_v23  ;;  %v1209_v10 = vpack.c.bf16 %v604_v7, %v602_v6  ;;  %v1211_v11 = vpack.c.bf16 %v609_v9, %v607_v8  ;;  %v606_v12 = vld [vmem:[#allocation5 + $0x2c0] sm:$0xff]  ;;  %v608_v13 = vld [vmem:[#allocation5 + $0x2d0] sm:$0xff]  ;;  %v611_v34 = vld [vmem:[#allocation5 + $0x2e8] sm:$0xff] }
  0x8c   : > { %1154 = vmatpush1.bf16.msra.mxu0 %v1153_v17  ;;  %1180 = vmatprep.subr.bf16.mxu1 %v1179_v25  ;;  %v1213_v14 = vpack.c.bf16 %v608_v13, %v606_v12  ;;  %v1744_v17 = vsub.s32 0, %v350_v16  ;;  %v347_v18 = vld [vmem:[%s1849_s2] sm:$0x3]  ;;  %v612_v38 = vld [vmem:[#allocation5 + $0x2f0] sm:$0xff]  ;;  %v717_v41 = vld [vmem:[#allocation7 + $0x8] sm:$0xff] }
  0x8d   : > { %1188 = vmatprep.subr.bf16.mxu0 %v1187_v39  ;;  %v356_v21 = vrot.slane %v347_v18, %v1749_v19  ;;  %v610_v37 = vld [vmem:[#allocation5 + $0x2e0] sm:$0xff]  ;;  %v718_v42 = vld [vmem:[#allocation7 + $0x10] sm:$0xff]  ;;  %v721_v47 = vld [vmem:[#allocation7 + $0x28] sm:$0xff] }
  0x8e   : > { %v352_v20 = vrot.slane %v347_v18, %v1744_v17  ;;  %v1217_v39 = vpack.c.bf16 %v612_v38, %v610_v37  ;;  %v716_v40 = vld [vmem:[#allocation7] sm:$0xff]  ;;  %v725_v53 = vld [vmem:[#allocation7 + $0x48] sm:$0xff]  ;;  %v730_v13 = vld [vmem:[#allocation7 + $0x70] sm:$0xff] }
  0x8f   : > { %424 = vmatmul.mubr.f32.vlgmr.msra.gmra.mrb[0].mxu0 %v313_v24  ;;  %1182 = vmatpush1.bf16.msra.mxu1 %v1181_v28  ;;  %v720_v46 = vld [vmem:[#allocation7 + $0x20] sm:$0xff] }
  0x90   : > { %429 = vmatprep.mubr.f32.mxu0 %v1496_v0  ;;  %1184 = vmatprep.subr.bf16.mxu1 %v1183_v32  ;;  %v1227_v48 = vpack.c.bf16 %v721_v47, %v720_v46  ;;  %v724_v52 = vld [vmem:[#allocation7 + $0x40] sm:$0xff] }
  0x91   : > { %1190 = vmatpush1.bf16.msra.mxu0 %v1189_v43  ;;  %v1219_v43 = vpack.c.bf16 %v717_v41, %v716_v40  ;;  %v1235_v54 = vpack.c.bf16 %v725_v53, %v724_v52  ;;  %v1047_v58 = vld [vmem:[%s1849_s2 + $0x2] sm:$0x3] }
  0x92   : > { %1192 = vmatprep.subr.bf16.mxu0 %v1191_v44  ;;  %v719_v44 = vld [vmem:[#allocation7 + $0x18] sm:$0xff]  ;;  %v485_v59 = vrot.slane %v1047_v58, %v1744_v17  ;;  %v489_v60 = vrot.slane %v1047_v58, %v1749_v19 }
  0x93   : > { %430 = vmatmul.mubr.f32.gmra.mrb[2].mxu0 %v314_v29  ;;  %1186 = vmatpush1.bf16.msra.mxu1 %v1185_v35  ;;  %v613_v35 = vld [vmem:[#allocation5 + $0x2f8] sm:$0xff]  ;;  %v1223_v45 = vpack.c.bf16 %v719_v44, %v718_v42 }
  0x94   : > { %691 = vmatprep.mubr.f32.mxu0 %v1496_v0  ;;  %v1215_v36 = vpack.c.bf16 %v613_v35, %v611_v34  ;;  %1220 = vmatprep.subr.bf16.mxu1 %v1219_v43 }
  0x95   : > { %1194 = vmatpush1.bf16.msra.mxu0 %v1193_v49  ;;  %v722_v49 = vld [vmem:[#allocation7 + $0x30] sm:$0xff] }
  0x96   : > { %1196 = vmatprep.subr.bf16.mxu0 %v1195_v50  ;;  %v723_v50 = vld [vmem:[#allocation7 + $0x38] sm:$0xff] }
  0x97   : > { %v1231_v51 = vpack.c.bf16 %v723_v50, %v722_v49 }
  0x99   : > { %1198 = vmatpush1.bf16.msra.mxu0 %v1197_v55  ;;  %v726_v55 = vld [vmem:[#allocation7 + $0x50] sm:$0xff] }
  0x9a   : > { %1200 = vmatprep.subr.bf16.mxu0 %v1199_v56  ;;  %v727_v56 = vld [vmem:[#allocation7 + $0x58] sm:$0xff] }
  0x9b   : > { %v1239_v57 = vpack.c.bf16 %v727_v56, %v726_v55 }
  0x9d   : > { %1202 = vmatpush1.bf16.msra.mxu0 %v1201_v61 }
  0x9e   : > { %1204 = vmatprep.subr.bf16.mxu0 %v1203_v62 }
  0xa1   : > { %1206 = vmatpush1.bf16.msra.mxu0 %v1205_v4 }
  0xa2   : > { %1208 = vmatprep.subr.bf16.mxu0 %v1207_v5 }
  0xa5   : > { %1210 = vmatpush1.bf16.msra.mxu0 %v1209_v10  ;;  %v728_v10 = vld [vmem:[#allocation7 + $0x60] sm:$0xff] }
  0xa6   : > { %1212 = vmatprep.subr.bf16.mxu0 %v1211_v11  ;;  %v729_v11 = vld [vmem:[#allocation7 + $0x68] sm:$0xff] }
  0xa7   : > { %v1243_v12 = vpack.c.bf16 %v729_v11, %v728_v10 }
  0xa9   : > { %1214 = vmatpush1.bf16.msra.mxu0 %v1213_v14  ;;  %v731_v14 = vld [vmem:[#allocation7 + $0x78] sm:$0xff] }
  0xaa   : > { %1216 = vmatprep.subr.bf16.mxu0 %v1215_v36  ;;  %v1247_v15 = vpack.c.bf16 %v731_v14, %v730_v13 }
  0xad   : > { %1218 = vmatpush1.bf16.msra.mxu0 %v1217_v39 }
 0x162   : > { %v425_v22 = vpop.f32.mrb[0].mxu0 }
 0x163   : > { %v426_v23 = vadd.f32 %v425_v22, %v352_v20  ;;  %v427_v24 = vpop.f32.mrb[1].mxu0 }
 0x164   : > { %v428_v25 = vadd.f32 %v427_v24, %v356_v21 }
 0x165   : > { %v440_v26 = vmul.f32 0.01, %v426_v23  ;;  %vm438_vm0 = vcmp.ge.f32.partialorder %v426_v23, 0.0 }
 0x166   : > { %436 = vst [vmem:[%s1755_s16] sm:$0xff] %v428_v25  ;;  %v431_v27 = vpop.f32.mrb[2].mxu0 }
 0x167   : > { %v432_v28 = vadd.f32 %v431_v27, %v352_v20  ;;  %v433_v29 = vpop.f32.mrb[3].mxu0  ;;  %v442_v30 = vsel %vm438_vm0, %v426_v23, %v440_v26 }
 0x168   : > { %v434_v31 = vadd.f32 %v433_v29, %v356_v21  ;;  %444 = vst [vmem:[%s1758_s19] sm:$0xff] %v442_v30  ;;  %557 = vmatmul.mubr.f32.vlgmr.msra.gmra.mrb[0].mxu1 %v442_v30  ;;  %v1057_v30 = vld [vmem:[%s1851_s4] ss:$0 sm:$0xff] }
 0x169   : > { %v441_v32 = vmul.f32 0.01, %v432_v28  ;;  %562 = vmatprep.mubr.f32.mxu1 %v1496_v0  ;;  %vm439_vm1 = vcmp.ge.f32.partialorder %v432_v28, 0.0  ;;  %1222 = vmatpush3.bf16.msra.mxu1 %v1219_v43 }
 0x16a   : > { %437 = vst [vmem:[%s1755_s16 + $0x8] sm:$0xff] %v434_v31  ;;  %1224 = vmatprep.subr.bf16.mxu1 %v1223_v45 }
 0x16b   : > { %v443_v33 = vsel %vm439_vm1, %v432_v28, %v441_v32 }
 0x16c   : > { %445 = vst [vmem:[%s1758_s19 + $0x8] sm:$0xff] %v443_v33  ;;  %563 = vmatmul.mubr.f32.gmra.mrb[2].mxu1 %v443_v33 }
 0x16d   : > { %1226 = vmatpush3.bf16.msra.mxu1 %v1223_v45 }
 0x16e   : > { %1228 = vmatprep.subr.bf16.mxu1 %v1227_v48 }
 0x171   : > { %1230 = vmatpush3.bf16.msra.mxu1 %v1227_v48 }
 0x172   : > { %1232 = vmatprep.subr.bf16.mxu1 %v1231_v51 }
 0x175   : > { %1234 = vmatpush3.bf16.msra.mxu1 %v1231_v51 }
 0x176   : > { %1236 = vmatprep.subr.bf16.mxu1 %v1235_v54 }
 0x179   : > { %1238 = vmatpush3.bf16.msra.mxu1 %v1235_v54 }
 0x17a   : > { %1240 = vmatprep.subr.bf16.mxu1 %v1239_v57 }
 0x17d   : > { %1242 = vmatpush3.bf16.msra.mxu1 %v1239_v57 }
 0x17e   : > { %1244 = vmatprep.subr.bf16.mxu1 %v1243_v12 }
 0x181   : > { %1246 = vmatpush3.bf16.msra.mxu1 %v1243_v12 }
 0x182   : > { %1248 = vmatprep.subr.bf16.mxu1 %v1247_v15 }
 0x185   : > { %1250 = vmatpush3.bf16.msra.mxu1 %v1247_v15 }
 0x23b   : > { %v558_v61 = vpop.f32.mrb[0].mxu1 }
 0x23c   : > { %v559_v62 = vadd.f32 %v558_v61, %v485_v59  ;;  %v560_v63 = vpop.f32.mrb[1].mxu1 }
 0x23d   : > { %v561_v1 = vadd.f32 %v560_v63, %v489_v60 }
 0x23e   : > { %vm572_vm2 = vcmp.ge.f32.partialorder %v559_v62, 0.0  ;;  %v574_v2 = vmul.f32 0.01, %v559_v62 }
 0x23f   : > { %1048 = vst [vmem:[%s1755_s16 + $0x10] sm:$0xff] %v561_v1  ;;  %v564_v3 = vpop.f32.mrb[2].mxu1 }
 0x240   : > { %v576_v4 = vsel %vm572_vm2, %v559_v62, %v574_v2  ;;  %v565_v5 = vadd.f32 %v564_v3, %v485_v59  ;;  %v566_v6 = vpop.f32.mrb[3].mxu1 }
 0x241   : > { %1050 = vst [vmem:[%s1758_s19 + $0x10] sm:$0xff] %v576_v4  ;;  %v567_v7 = vadd.f32 %v566_v6, %v489_v60  ;;  %692 = vmatmul.mubr.f32.vlgmr.msra.gmra.mrb[4].mxu0 %v576_v4 }
 0x242   : > { %v575_v8 = vmul.f32 0.01, %v565_v5  ;;  %697 = vmatprep.mubr.f32.mxu0 %v1496_v0  ;;  %vm573_vm3 = vcmp.ge.f32.partialorder %v565_v5, 0.0  ;;  %v1052_v0 = vld [vmem:[%s1849_s2 + $0x4] sm:$0x3] }
 0x243   : > { %1049 = vst [vmem:[%s1755_s16 + $0x18] sm:$0xff] %v567_v7  ;;  %v620_v16 = vrot.slane %v1052_v0, %v1744_v17  ;;  %v624_v18 = vrot.slane %v1052_v0, %v1749_v19 }
 0x244   : > { %v577_v9 = vsel %vm573_vm3, %v565_v5, %v575_v8 }
 0x245   : > { %1051 = vst [vmem:[%s1758_s19 + $0x18] sm:$0xff] %v577_v9  ;;  %698 = vmatmul.mubr.f32.gmra.mrb[6].mxu0 %v577_v9 }
 0x314   : > { %v693_v20 = vpop.f32.mrb[4].mxu0 }
 0x315   : > { %v694_v21 = vadd.f32 %v693_v20, %v620_v16  ;;  %v695_v22 = vpop.f32.mrb[5].mxu0 }
 0x316   : > { %v696_v23 = vadd.f32 %v695_v22, %v624_v18 }
 0x317   : > { %v709_v24 = vmul.f32 0.01, %v694_v21  ;;  %vm707_vm4 = vcmp.ge.f32.partialorder %v694_v21, 0.0 }
 0x318   : > { %1053 = vst [vmem:[%s1755_s16 + $0x20] sm:$0xff] %v696_v23  ;;  %v699_v25 = vpop.f32.mrb[6].mxu0 }
 0x319   : > { %v700_v26 = vadd.f32 %v699_v25, %v620_v16  ;;  %v701_v27 = vpop.f32.mrb[7].mxu0  ;;  %v711_v28 = vsel %vm707_vm4, %v694_v21, %v709_v24 }
 0x31a   : > { %v702_v29 = vadd.f32 %v701_v27, %v624_v18  ;;  %1055 = vst [vmem:[%s1758_s19 + $0x20] sm:$0xff] %v711_v28  ;;  %1120 = vmatprep.mubr.f32.mxu1 %v711_v28 }
 0x31b   : > { %vm708_vm5 = vcmp.ge.f32.partialorder %v700_v26, 0.0  ;;  %v710_v17 = vmul.f32 0.01, %v700_v26 }
 0x31c   : > { %1054 = vst [vmem:[%s1755_s16 + $0x28] sm:$0xff] %v702_v29 }
 0x31d   : > { %v712_v19 = vsel %vm708_vm5, %v700_v26, %v710_v17 }
 0x31e   : > { %1056 = vst [vmem:[%s1758_s19 + $0x28] sm:$0xff] %v712_v19  ;;  %1121 = vmatmul.mubr.f32.vlgmr.msra.gmra.mrb[4].mxu1 %v712_v19 }
 0x3f1   : > { %v1122_v31 = vpop.f32.mrb[4].mxu1 }
 0x3f2   : > { %v811_v32 = vadd.f32 %v1122_v31, %v1057_v30  ;;  %v805_v33 = vpop.f32.mrb[5].mxu1 }
 0x3f3   : > { %v806_v34 = vadd.f32 %v1057_v30, %v805_v33 }
 0x3f4   : > { %1059 = vst [vmem:[%s1755_s16 + $0x38] sm:$0xff] %v811_v32 }
 0x3f5   : > { %1058 = vst [vmem:[%s1755_s16 + $0x30] sm:$0xff] %v806_v34 }
 0x3f6   : > { %s1068_s27 = sshll.u32 %s1567_s25, 8  ;;  %s852_s29 = sshll.u32 %s1758_s19, 4  ;;  %s853_s29 = int_to_ptr.vmem [resolvable:$true] %s852_s29 }
 0x3f7   : > { %s835_s20 = scalar_lea.hbm %s1852_s5, %s1068_s27  ;;  %s1497_s30 = smov 256  }
 0x3f8   : > { %p1867_p11 = scmp.ne.s32.totalorder %s1862_s8, 0  ;;  %s1498_s13 = smov 512  }
 0x3f9   : > { %s1499_s10 = smov 2   ;;  %s1500_s15 = smov 128  }
 0x3fa   : > { %1262 = sst [smem:[#allocation12]] (%p1867_p11), %s1497_s30  ;;  %s1501_s25 = smov 8  }
 0x3fb   : > { %1263 = sst [smem:[#allocation12 + $0x1]] (%p1867_p11), %s1498_s13  ;;  %s1502_s19 = smov [#allocation11]  }
 0x3fc   : > { %1264 = sst [smem:[#allocation12 + $0x2]] (%p1867_p11), %s1499_s10  ;;  %s1503_s14 = smov 0  }
 0x3fd   : > { %1265 = sst [smem:[#allocation12 + $0x3]] (%p1867_p11), %s1500_s15 }
 0x3fe   : > { %1266 = sst [smem:[#allocation12 + $0x4]] (%p1867_p11), %s1500_s15 }
 0x3ff   : > { %1267 = sst [smem:[#allocation12 + $0x5]] (%p1867_p11), %s1501_s25 }
 0x400   : > { %1268 = dma.general (%p1867_p11), %s853_s29, 768, %s835_s20, %s818_s7, %s1502_s19, [#allocation12], %s1503_s14, 0  }
 0x401   : > { %s880_s30 = scalar_lea.hbm %s1853_s6, %s1068_s27  ;;  %s897_s13 = sshll.u32 %s1755_s16, 4  ;;  %s898_s13 = int_to_ptr.vmem [resolvable:$true] %s897_s13 }
 0x402   : > { %s1504_s10 = smov 256   ;;  %s1505_s15 = smov 512  }
 0x403   : > { %1269 = sst [smem:[#allocation14]] (%p1867_p11), %s1504_s10  ;;  %s1506_s7 = smov 2  }
 0x404   : > { %1270 = sst [smem:[#allocation14 + $0x1]] (%p1867_p11), %s1505_s15  ;;  %s1507_s29 = smov 128  }
 0x405   : > { %1271 = sst [smem:[#allocation14 + $0x2]] (%p1867_p11), %s1506_s7  ;;  %s1508_s20 = smov 8  }
 0x406   : > { %1272 = sst [smem:[#allocation14 + $0x3]] (%p1867_p11), %s1507_s29  ;;  %s1509_s27 = smov [#allocation13]  }
 0x407   : > { %1273 = sst [smem:[#allocation14 + $0x4]] (%p1867_p11), %s1507_s29  ;;  %s1510_s16 = smov 0  }
 0x408   : > { %1274 = sst [smem:[#allocation14 + $0x5]] (%p1867_p11), %s1508_s20 }
 0x409   : > { %1275 = dma.general (%p1867_p11), %s898_s13, 1024, %s880_s30, %s823_s12, %s1509_s27, [#allocation14], %s1510_s16, 0  }
 0x40a PF: > { %s925_s25 = sand.u32 1, %s1475_s21   ;;  %p1868_p0 = scmp.ne.s32.totalorder %s1858_s28, 0 }
 0x40b   : > { %p1869_p1 = scmp.ge.s32.totalorder %s1487_s24, 2  ;;  %s926_s19 = scalar_lea.sflag [#allocation4], %s925_s25 }
 0x40d   : > { %p1290_p3 = pnand %p1869_p1, %p1868_p0 }
 0x40f   : > { %1466 = dma.done.wait (!%p1290_p3), %s926_s19, 768  }
 0x410   : > { %1468 = vsyncadd (!%p1290_p3), %s926_s19, 4294966528  ;;  %s935_s14 = scalar_lea.sflag [#allocation10], %s925_s25 }
 0x411   : > { %1470 = dma.done.wait (!%p1290_p3), %s935_s14, 1024  }
 0x412   : > { %1472 = vsyncadd (!%p1290_p3), %s935_s14, 4294966272  ;;  %p24_p5 = scmp.ge.s32.totalorder %s1659_s26, 4   ;;  %s1870_s21 = smov %s1479_s22 }
 0x413   : > { %s1871_s22 = smov %s1483_s23  ;;  %s1872_s23 = smov %s1668_s11 }
 0x414   : > { %s1873_s24 = smov %s1659_s26  ;;  %26 = sbr.rel (!%p24_p5) target bundleno = 8 (0x8), region = 129 }
 0x41b   :  { %940 = vsyncpa [#allocation3], 1 }
 0x41c   :  { %942 = vsyncpa [#allocation3 + $0x1], 1 }
 0x41d   :  { %943 = vsyncpa [#allocation6], 1 }
 0x41e   :  { %944 = vsyncpa [#allocation4], 1 }
 0x41f   :  { %946 = vsyncpa [#allocation4 + $0x1], 1 }
 0x420   :  { %947 = vsyncpa [#allocation10], 1 }
 0x421   :  { %949 = vsyncpa [#allocation10 + $0x1], 1 }

</bundles_post_ra>
